<compile_context>
chip_gen: v7x
topology: tpu7x:2x2x1
jax: 0.10.0
libtpu: 0.0.40
codegen_flags: <defaults>
</compile_context>

<pallas_src>
import math

import jax
import jax.numpy as jnp
from jax.experimental import pallas as pl
from jax.experimental.pallas import tpu as pltpu


def _round_up(x: int, m: int) -> int:
    return (x + m - 1) // m * m


def _embed_kernel(tok_ids_ref, tok_table_ref, pos_slab_ref, out_ref):
    # tok_ids_ref:   (TM, 1)  int32   token id per flattened (batch*seq) row
    # tok_table_ref: (Vp, Ep) table-dtype, zero-padded, VMEM-resident
    # pos_slab_ref:  (TM, Ep) table-dtype, pos_table tiled to the M tile
    # out_ref:       (TM, Ep)
    tok = tok_ids_ref[...]                               # (TM, 1)
    tm = out_ref.shape[0]
    vp = tok_table_ref.shape[0]
    tdt = tok_table_ref.dtype

    # Lane-dense one-hot; compare + cast fused into a single select in the
    # table dtype.  (The iota is grid-invariant, but caching it in scratch
    # under pid==0 is unsafe with a "parallel" grid axis on multi-TC parts.)
    iota = jax.lax.broadcasted_iota(jnp.int32, (tm, vp), 1)
    one_hot = jnp.where(iota == tok, jnp.ones((), tdt), jnp.zeros((), tdt))

    # Gather-as-matmul on the MXU, then a free VPU add for positions.
    emb = jnp.dot(one_hot, tok_table_ref[...], preferred_element_type=jnp.float32)
    emb = emb + pos_slab_ref[...].astype(jnp.float32)
    out_ref[...] = emb.astype(out_ref.dtype)


def prepare_token_position_embedding(tok_table, pos_table, *, tile_m=256):
    """One-time setup: pad tables, build the positional slab, size the M tile.

    tok_table: [V, E], pos_table: [W, E].  Pass bf16 tables for production
    configs; the one-hot gather copies rows exactly.
    """
    V, E = tok_table.shape
    W, E2 = pos_table.shape
    assert E == E2, "embedding widths must match"
    dtype = tok_table.dtype

    # TM: multiple of 8 (sublanes) and of W so every tile starts at position 0.
    tm = _round_up(max(int(tile_m), 1), math.lcm(W, 8))
    Vp = _round_up(V, 128)                       # lane-dense one-hot contraction
    Ep = E if E % 128 == 0 else _round_up(E, 128)  # only pad when actually needed

    if (Vp, Ep) != (V, E):
        tok_table_p = jnp.zeros((Vp, Ep), dtype).at[:V, :E].set(tok_table)
    else:
        tok_table_p = tok_table
    pos_p = pos_table if Ep == E else jnp.zeros((W, Ep), dtype).at[:, :E].set(pos_table)
    pos_slab = jnp.tile(pos_p, (tm // W, 1))     # (TM, Ep), replaces the 2nd matmul

    return dict(tok_table=tok_table_p, pos_slab=pos_slab, dtype=dtype,
                V=V, E=E, W=W, Vp=Vp, Ep=Ep, tile_m=tm)


def token_and_position_embedding(tokens, params):
    """tokens: int [B, S] with S == window_len -> [B, S, E]."""
    B, S = tokens.shape
    assert S == params["W"], "sequence length must equal window_len"
    tm, Vp, Ep, E = params["tile_m"], params["Vp"], params["Ep"], params["E"]
    dtype = params["dtype"]

    M = B * S
    Mp = _round_up(M, tm)
    tok_flat = tokens.astype(jnp.int32).reshape(M)
    if Mp != M:
        tok_ids = jnp.zeros((Mp, 1), jnp.int32).at[:M, 0].set(tok_flat)
    else:
        tok_ids = tok_flat[:, None]

    # VMEM budget: single-buffered resident table + slab, double-buffered
    # id/out tiles, 2x headroom (covers the double-buffered-table fallback).
    def _vmem_tile_bytes(rows, cols, dt):
        return _round_up(rows, 8) * _round_up(cols, 128) * jnp.dtype(dt).itemsize
    need = (_vmem_tile_bytes(Vp, Ep, dtype)          # token table (resident)
            + _vmem_tile_bytes(tm, Ep, dtype)        # positional slab (resident)
            + 2 * _vmem_tile_bytes(tm, 1, jnp.int32) # id tile (pipelined)
            + 2 * _vmem_tile_bytes(tm, Ep, dtype))   # out tile (pipelined)
    vmem_limit = int(min(max(2 * need, 32 * 1024 * 1024), 128 * 1024 * 1024))

    def build(single_buffer_tables):
        kw = {"pipeline_mode": pl.Buffered(1)} if single_buffer_tables else {}
        return pl.pallas_call(
            _embed_kernel,
            out_shape=jax.ShapeDtypeStruct((Mp, Ep), dtype),
            grid_spec=pltpu.PrefetchScalarGridSpec(
                num_scalar_prefetch=0,
                grid=(Mp // tm,),
                in_specs=[
                    pl.BlockSpec((tm, 1), lambda i: (i, 0)),        # token ids
                    pl.BlockSpec((Vp, Ep), lambda i: (0, 0), **kw),  # table (resident)
                    pl.BlockSpec((tm, Ep), lambda i: (0, 0), **kw),  # pos slab (resident)
                ],
                out_specs=pl.BlockSpec((tm, Ep), lambda i: (i, 0)),
            ),
            compiler_params=pltpu.CompilerParams(
                dimension_semantics=("parallel",),   # shard M tiles across TCs (v7x)
                vmem_limit_bytes=vmem_limit,
            ),
        )

    args = (tok_ids, params["tok_table"], params["pos_slab"])
    try:
        out = build(True)(*args)
    except Exception:
        # Fallback for JAX versions without per-BlockSpec buffer counts.
        out = build(False)(*args)

    if Mp != M or Ep != E:
        out = out[:M, :E]
    return out.reshape(B, S, E)


if __name__ == "__main__":
    # Small shapes consistent with the module's forward pass.
    vocab_len, embedding_len, window_len = 64, 32, 8
    batch = 2

    key = jax.random.PRNGKey(0)
    k_tok_tbl, k_pos_tbl, k_ids = jax.random.split(key, 3)

    # nn.Embedding default init is N(0, 1).  (Use bf16 here for production SD.)
    tok_table = jax.random.normal(k_tok_tbl, (vocab_len, embedding_len), jnp.float32)
    pos_table = jax.random.normal(k_pos_tbl, (window_len, embedding_len), jnp.float32)
    tokens = jax.random.randint(k_ids, (batch, window_len), 0, vocab_len, jnp.int32)

    # One-time setup (hoisted out of the hot path), then the kernel call.
    params = prepare_token_position_embedding(tok_table, pos_table, tile_m=256)
    out = token_and_position_embedding(tokens, params)
    out = jax.block_until_ready(out)

    # Pure-JAX reference.
    ref = jnp.take(tok_table, tokens, axis=0) + pos_table[None, :, :]
    assert out.shape == (batch, window_len, embedding_len)
    assert jnp.allclose(out, ref, atol=1e-5, rtol=1e-5)

    print("KERNEL_OK")
</pallas_src>

<mosaic_0001>
module attributes {stable_mosaic.version = 11 : i64} {
  func.func @_embed_kernel(%arg0: i32, %arg1: memref<256x1xi32, #tpu.memory_space<vmem>>, %arg2: memref<128x128xf32, #tpu.memory_space<vmem>>, %arg3: memref<256x128xf32, #tpu.memory_space<vmem>>, %arg4: memref<256x128xf32, #tpu.memory_space<vmem>>) attributes {dimension_semantics = [#tpu.dimension_semantics<parallel>], iteration_bounds = array<i64: 1>, scalar_prefetch = 0 : i64, scratch_operands = 0 : i64, tpu.core_type = #tpu.core_type<tc>, window_params = [{transform_indices = @transform_0, window_bounds = array<i64: 256, 1>}, {pipeline_mode = #tpu.pipeline_mode<synchronous>, transform_indices = @transform_1, window_bounds = array<i64: 128, 128>}, {pipeline_mode = #tpu.pipeline_mode<synchronous>, transform_indices = @transform_2, window_bounds = array<i64: 256, 128>}, {transform_indices = @transform_3, window_bounds = array<i64: 256, 128>}]} {
    %c0 = arith.constant 0 : index
    %c0_0 = arith.constant 0 : index
    %0 = vector.load %arg1[%c0, %c0_0] : memref<256x1xi32, #tpu.memory_space<vmem>>, vector<256x1xi32>
    %1 = tpu.iota {dimensions = array<i32: 1>} : vector<256x128xi32>
    %2 = vector.broadcast %0 : vector<256x1xi32> to vector<256x128xi32>
    %3 = arith.cmpi eq, %1, %2 : vector<256x128xi32>
    %cst = arith.constant 1.000000e+00 : f32
    %cst_1 = arith.constant 0.000000e+00 : f32
    %4 = vector.broadcast %cst : f32 to vector<256x128xf32>
    %5 = vector.broadcast %cst_1 : f32 to vector<256x128xf32>
    %6 = arith.select %3, %4, %5 : vector<256x128xi1>, vector<256x128xf32>
    %c0_2 = arith.constant 0 : index
    %c0_3 = arith.constant 0 : index
    %7 = vector.load %arg2[%c0_2, %c0_3] : memref<128x128xf32, #tpu.memory_space<vmem>>, vector<128x128xf32>
    %cst_4 = arith.constant dense<0.000000e+00> : vector<256x128xf32>
    %8 = tpu.matmul %6, %7, %cst_4 {dimension_numbers = #tpu.dot_dimension_numbers<[1], [0], [0], [1], [0, 0, 1, 1], [], []>} : vector<256x128xf32>, vector<128x128xf32>, vector<256x128xf32> -> vector<256x128xf32>
    %c0_5 = arith.constant 0 : index
    %c0_6 = arith.constant 0 : index
    %9 = vector.load %arg3[%c0_5, %c0_6] : memref<256x128xf32, #tpu.memory_space<vmem>>, vector<256x128xf32>
    %10 = arith.addf %8, %9 : vector<256x128xf32>
    %c0_7 = arith.constant 0 : index
    %c0_8 = arith.constant 0 : index
    %11 = vector.load %arg4[%c0_7, %c0_8] : memref<256x128xf32, #tpu.memory_space<vmem>>, vector<256x128xf32>
    tpu.vector_store %arg4[%c0_7, %c0_8], %10 {strides = array<i32>} : memref<256x128xf32, #tpu.memory_space<vmem>>, vector<256x128xf32>,
    return
  }
  func.func @transform_0(%arg0: i32) -> (i32, i32) {
    %c0_i32 = arith.constant 0 : i32
    %c0_i32_0 = arith.constant 0 : i32
    return %arg0, %c0_i32 : i32, i32
  }
  func.func @transform_1(%arg0: i32) -> (i32, i32) {
    %c0_i32 = arith.constant 0 : i32
    %c0_i32_0 = arith.constant 0 : i32
    %c0_i32_1 = arith.constant 0 : i32
    return %c0_i32, %c0_i32_0 : i32, i32
  }
  func.func @transform_2(%arg0: i32) -> (i32, i32) {
    %c0_i32 = arith.constant 0 : i32
    %c0_i32_0 = arith.constant 0 : i32
    %c0_i32_1 = arith.constant 0 : i32
    return %c0_i32, %c0_i32_0 : i32, i32
  }
  func.func @transform_3(%arg0: i32) -> (i32, i32) {
    %c0_i32 = arith.constant 0 : i32
    %c0_i32_0 = arith.constant 0 : i32
    return %arg0, %c0_i32 : i32, i32
  }
}

module attributes {stable_mosaic.version = 11 : i64} {
  func.func @_embed_kernel(%arg0: i32, %arg1: memref<256x1xi32, #tpu.memory_space<vmem>>, %arg2: memref<128x128xf32, #tpu.memory_space<vmem>>, %arg3: memref<256x128xf32, #tpu.memory_space<vmem>>, %arg4: memref<256x128xf32, #tpu.memory_space<vmem>>) attributes {dimension_semantics = [#tpu.dimension_semantics<parallel>], iteration_bounds = array<i64: 1>, scalar_prefetch = 0 : i64, scratch_operands = 0 : i64, tpu.core_type = #tpu.core_type<tc>, window_params = [{transform_indices = @transform_0, window_bounds = array<i64: 256, 1>}, {pipeline_mode = #tpu.pipeline_mode<synchronous>, transform_indices = @transform_1, window_bounds = array<i64: 128, 128>}, {pipeline_mode = #tpu.pipeline_mode<synchronous>, transform_indices = @transform_2, window_bounds = array<i64: 256, 128>}, {transform_indices = @transform_3, window_bounds = array<i64: 256, 128>}]} {
    %c0 = arith.constant 0 : index
    %c0_0 = arith.constant 0 : index
    %0 = vector.load %arg1[%c0, %c0_0] : memref<256x1xi32, #tpu.memory_space<vmem>>, vector<256x1xi32>
    %1 = tpu.iota {dimensions = array<i32: 1>} : vector<256x128xi32>
    %2 = vector.broadcast %0 : vector<256x1xi32> to vector<256x128xi32>
    %3 = arith.cmpi eq, %1, %2 : vector<256x128xi32>
    %cst = arith.constant 1.000000e+00 : f32
    %cst_1 = arith.constant 0.000000e+00 : f32
    %4 = vector.broadcast %cst : f32 to vector<256x128xf32>
    %5 = vector.broadcast %cst_1 : f32 to vector<256x128xf32>
    %6 = arith.select %3, %4, %5 : vector<256x128xi1>, vector<256x128xf32>
    %c0_2 = arith.constant 0 : index
    %c0_3 = arith.constant 0 : index
    %7 = vector.load %arg2[%c0_2, %c0_3] : memref<128x128xf32, #tpu.memory_space<vmem>>, vector<128x128xf32>
    %cst_4 = arith.constant dense<0.000000e+00> : vector<256x128xf32>
    %8 = tpu.matmul %6, %7, %cst_4 {dimension_numbers = #tpu.dot_dimension_numbers<[1], [0], [0], [1], [0, 0, 1, 1], [], []>} : vector<256x128xf32>, vector<128x128xf32>, vector<256x128xf32> -> vector<256x128xf32>
    %c0_5 = arith.constant 0 : index
    %c0_6 = arith.constant 0 : index
    %9 = vector.load %arg3[%c0_5, %c0_6] : memref<256x128xf32, #tpu.memory_space<vmem>>, vector<256x128xf32>
    %10 = arith.addf %8, %9 : vector<256x128xf32>
    %c0_7 = arith.constant 0 : index
    %c0_8 = arith.constant 0 : index
    %11 = vector.load %arg4[%c0_7, %c0_8] : memref<256x128xf32, #tpu.memory_space<vmem>>, vector<256x128xf32>
    tpu.vector_store %arg4[%c0_7, %c0_8], %10 {strides = array<i32>} : memref<256x128xf32, #tpu.memory_space<vmem>>, vector<256x128xf32>,
    return
  }
  func.func @transform_0(%arg0: i32) -> (i32, i32) {
    %c0_i32 = arith.constant 0 : i32
    %c0_i32_0 = arith.constant 0 : i32
    return %arg0, %c0_i32 : i32, i32
  }
  func.func @transform_1(%arg0: i32) -> (i32, i32) {
    %c0_i32 = arith.constant 0 : i32
    %c0_i32_0 = arith.constant 0 : i32
    %c0_i32_1 = arith.constant 0 : i32
    return %c0_i32, %c0_i32_0 : i32, i32
  }
  func.func @transform_2(%arg0: i32) -> (i32, i32) {
    %c0_i32 = arith.constant 0 : i32
    %c0_i32_0 = arith.constant 0 : i32
    %c0_i32_1 = arith.constant 0 : i32
    return %c0_i32, %c0_i32_0 : i32, i32
  }
  func.func @transform_3(%arg0: i32) -> (i32, i32) {
    %c0_i32 = arith.constant 0 : i32
    %c0_i32_0 = arith.constant 0 : i32
    return %arg0, %c0_i32 : i32, i32
  }
}

</mosaic_0001>

<bundles_post_ra>
// kernel: tpu_custom_call.1
= control target key start
LH: loop header
LB: loop body
LE: loop exit
PB: predicated region body
PF: predicated region fallthrough
CT: control target
= control target key end

     0   :  { %8 = vsyncpa [#allocation3], 0  ;;  %s1123_s0 = inlined_call_operand.vmem [shape: s32[256,1], index: 0, kind: input, shape index: {}]   ;;  %s1124_s1 = inlined_call_operand.hbm [shape: f32[128,128], index: 1, kind: input, shape index: {}]   ;;  %s1125_s2 = inlined_call_operand.vmem [shape: f32[256,128], index: 2, kind: input, shape index: {}]   ;;  %s1126_s3 = inlined_call_operand.hbm [shape: f32[256,128], index: 3, kind: output, shape index: {}]  }
   0x1   :  { %9 = vsyncpa [#allocation4], 0  ;;  %s809_s12 = smov [#allocation2]   ;;  %s761_s16 = scalar_lea.hbm %s1124_s1, 2048 }
   0x2   :  { %s17_s13 = sshll.u32 %s809_s12, 4  ;;  %p762_p0 = scmp.ne.s32.totalorder %s1124_s1, %s761_s16  ;;  %s18_s13 = int_to_ptr.vmem [resolvable:$true] %s17_s13 }
   0x3   :  { %p765_p1 = scmp.lt.u32.totalorder %s761_s16, %s1124_s1 }
   0x5   :  { %p767_p2 = pnand %p765_p1, %p762_p0 }
   0x7   :  { %770 = shalt.err (!%p767_p2)
}
   0x8   :  { %s771_s21 = scalar_lea.vmem %s18_s13, 2048  ;;  %p776_p4 = scmp.lt.s32.totalorder %s18_s13, %s18_s13 }
   0x9   :  { %p772_p3 = scmp.ne.s32.totalorder %s18_s13, %s771_s21  ;;  %p777_p5 = scmp.lt.s32.totalorder %s771_s21, %s771_s21 }
   0xb   :  { %p778_p6 = por %p777_p5, %p776_p4 }
   0xd   :  { %p779_p7 = pnand %p778_p6, %p772_p3 }
   0xf   :  { %782 = shalt.err (!%p779_p7)
}
  0x10   :  { %s810_s22 = smov 128   ;;  %s811_s23 = smov 8  }
  0x11   :  { %23 = dma.hbm_to_vmem [thread:$0]  %s1124_s1, 2048, %s18_s13, [#allocation3], %s810_s22, %s810_s22, %s811_s23  }
  0x12   :  { %805 = dma.done.wait [#allocation3], 2048  }
  0x13   :  { %806 = vsyncadd [#allocation3], 4294965248  ;;  %v812_v0 = vmov 0   ;;  %v30_v1 = vld [vmem:[%s1123_s0 + $0x8] sm:$0xff]  ;;  %v29_v2 = vld [vmem:[%s1123_s0] sm:$0xff]  ;;  %v61_v57 = vlaneseq  ;;  %v813_v61 = vmov 1.0  }
  0x14   :  { %760 = vset.pattern.permute.xlu1 %v812_v0  ;;  %759 = vset.pattern.permute.xlu0 %v812_v0  ;;  %v46_v3 = vld [vmem:[%s1123_s0 + $0x88] sm:$0xff]  ;;  %v45_v4 = vld [vmem:[%s1123_s0 + $0x80] sm:$0xff]  ;;  %v47_v5 = vld [vmem:[%s1123_s0 + $0x90] sm:$0xff]  ;;  %s814_s19 = smov [#allocation5]  }
  0x15   :  { %67 = vperm.xlu1 %760, %v30_v1   ;;  %64 = vperm.xlu0 %759, %v29_v2   ;;  %v31_v6 = vld [vmem:[%s1123_s0 + $0x10] sm:$0xff]  ;;  %v48_v7 = vld [vmem:[%s1123_s0 + $0x98] sm:$0xff]  ;;  %v223_v9 = vld [vmem:[#allocation2] sm:$0xff]  ;;  %v946_v58 = vand.u32 127, %v61_v57  ;;  %s533_s20 = sshll.u32 %s814_s19, 4  ;;  %s534_s20 = int_to_ptr.vmem [resolvable:$true] %s533_s20 }
  0x16   :  { %v32_v8 = vld [vmem:[%s1123_s0 + $0x18] sm:$0xff]  ;;  %v224_v10 = vld [vmem:[#allocation2 + $0x8] sm:$0xff]  ;;  %v225_v11 = vld [vmem:[#allocation2 + $0x10] sm:$0xff]  ;;  %s783_s21 = scalar_lea.vmem %s534_s20, 4096  ;;  %p788_p9 = scmp.lt.s32.totalorder %s534_s20, %s534_s20 }
  0x17   :  { %v226_v12 = vld [vmem:[#allocation2 + $0x18] sm:$0xff]  ;;  %v705_v13 = vpack.c.bf16 %v224_v10, %v223_v9  ;;  %v227_v15 = vld [vmem:[#allocation2 + $0x20] sm:$0xff]  ;;  %v228_v16 = vld [vmem:[#allocation2 + $0x28] sm:$0xff]  ;;  %p784_p8 = scmp.ne.s32.totalorder %s534_s20, %s783_s21  ;;  %p789_p10 = scmp.lt.s32.totalorder %s783_s21, %s783_s21 }
  0x18   :  { %v709_v14 = vpack.c.bf16 %v226_v12, %v225_v11  ;;  %v49_v17 = vld [vmem:[%s1123_s0 + $0xa0] sm:$0xff]  ;;  %v713_v19 = vpack.c.bf16 %v228_v16, %v227_v15  ;;  %v229_v20 = vld [vmem:[#allocation2 + $0x30] sm:$0xff]  ;;  %v230_v21 = vld [vmem:[#allocation2 + $0x38] sm:$0xff] }
  0x19   :  { %115 = vperm.xlu1 %760, %v46_v3   ;;  %112 = vperm.xlu0 %759, %v45_v4   ;;  %v33_v18 = vld [vmem:[%s1123_s0 + $0x20] sm:$0xff]  ;;  %v50_v22 = vld [vmem:[%s1123_s0 + $0xa8] sm:$0xff]  ;;  %v717_v24 = vpack.c.bf16 %v230_v21, %v229_v20  ;;  %v51_v27 = vld [vmem:[%s1123_s0 + $0xb0] sm:$0xff]  ;;  %p790_p11 = por %p789_p10, %p788_p9 }
  0x1a   :  { %706 = vmatprep.subr.bf16.mxu0 %v705_v13  ;;  %737 = vmatprep.subr.bf16.mxu1 %v705_v13  ;;  %v34_v23 = vld [vmem:[%s1123_s0 + $0x28] sm:$0xff]  ;;  %v231_v25 = vld [vmem:[#allocation2 + $0x40] sm:$0xff]  ;;  %v35_v28 = vld [vmem:[%s1123_s0 + $0x30] sm:$0xff] }
  0x1b   :  { %708 = vmatpush3.bf16.msra.mxu0 %v705_v13  ;;  %745 = vmatpush3.bf16.msra.mxu1 %v705_v13  ;;  %v232_v26 = vld [vmem:[#allocation2 + $0x48] sm:$0xff]  ;;  %v233_v30 = vld [vmem:[#allocation2 + $0x50] sm:$0xff]  ;;  %v234_v31 = vld [vmem:[#allocation2 + $0x58] sm:$0xff]  ;;  %p791_p12 = pnand %p790_p11, %p784_p8 }
  0x1c   :  { %710 = vmatprep.subr.bf16.mxu0 %v709_v14  ;;  %738 = vmatprep.subr.bf16.mxu1 %v709_v14  ;;  %v721_v29 = vpack.c.bf16 %v232_v26, %v231_v25  ;;  %v52_v32 = vld [vmem:[%s1123_s0 + $0xb8] sm:$0xff]  ;;  %v725_v34 = vpack.c.bf16 %v234_v31, %v233_v30  ;;  %v235_v35 = vld [vmem:[#allocation2 + $0x60] sm:$0xff]  ;;  %v236_v36 = vld [vmem:[#allocation2 + $0x68] sm:$0xff] }
  0x1d   :  { %118 = vperm.xlu1 %760, %v47_v5   ;;  %70 = vperm.xlu0 %759, %v31_v6   ;;  %v36_v33 = vld [vmem:[%s1123_s0 + $0x38] sm:$0xff]  ;;  %v53_v37 = vld [vmem:[%s1123_s0 + $0xc0] sm:$0xff]  ;;  %v729_v39 = vpack.c.bf16 %v236_v36, %v235_v35  ;;  %v237_v40 = vld [vmem:[#allocation2 + $0x70] sm:$0xff] }
  0x1e   :  { %v37_v38 = vld [vmem:[%s1123_s0 + $0x40] sm:$0xff]  ;;  %v238_v41 = vld [vmem:[#allocation2 + $0x78] sm:$0xff]  ;;  %v54_v42 = vld [vmem:[%s1123_s0 + $0xc8] sm:$0xff] }
  0x1f   :  { %712 = vmatpush3.bf16.msra.mxu0 %v709_v14  ;;  %746 = vmatpush3.bf16.msra.mxu1 %v709_v14  ;;  %v38_v43 = vld [vmem:[%s1123_s0 + $0x48] sm:$0xff]  ;;  %v733_v44 = vpack.c.bf16 %v238_v41, %v237_v40  ;;  %v55_v45 = vld [vmem:[%s1123_s0 + $0xd0] sm:$0xff]  ;;  %v56_v47 = vld [vmem:[%s1123_s0 + $0xd8] sm:$0xff] }
  0x20   :  { %714 = vmatprep.subr.bf16.mxu0 %v713_v19  ;;  %739 = vmatprep.subr.bf16.mxu1 %v713_v19  ;;  %v39_v46 = vld [vmem:[%s1123_s0 + $0x50] sm:$0xff]  ;;  %v40_v48 = vld [vmem:[%s1123_s0 + $0x58] sm:$0xff]  ;;  %v57_v49 = vld [vmem:[%s1123_s0 + $0xe0] sm:$0xff] }
  0x21   :  { %121 = vperm.xlu1 %760, %v48_v7   ;;  %73 = vperm.xlu0 %759, %v32_v8   ;;  %v41_v50 = vld [vmem:[%s1123_s0 + $0x60] sm:$0xff]  ;;  %v58_v51 = vld [vmem:[%s1123_s0 + $0xe8] sm:$0xff]  ;;  %v59_v53 = vld [vmem:[%s1123_s0 + $0xf0] sm:$0xff] }
  0x22   :  { %v42_v52 = vld [vmem:[%s1123_s0 + $0x68] sm:$0xff]  ;;  %v43_v54 = vld [vmem:[%s1123_s0 + $0x70] sm:$0xff]  ;;  %v60_v55 = vld [vmem:[%s1123_s0 + $0xf8] sm:$0xff] }
  0x23   :  { %716 = vmatpush3.bf16.msra.mxu0 %v713_v19  ;;  %747 = vmatpush3.bf16.msra.mxu1 %v713_v19  ;;  %v44_v56 = vld [vmem:[%s1123_s0 + $0x78] sm:$0xff]  ;;  %v255_v35 = vld [vmem:[%s1125_s2 + $0x80] sm:$0xff] }
  0x24   :  { %718 = vmatprep.subr.bf16.mxu0 %v717_v24  ;;  %740 = vmatprep.subr.bf16.mxu1 %v717_v24  ;;  %v242_v40 = vld [vmem:[%s1125_s2 + $0x18] sm:$0xff] }
  0x25   :  { %124 = vperm.xlu1 %760, %v49_v17   ;;  %76 = vperm.xlu0 %759, %v33_v18   ;;  %v258_v41 = vld [vmem:[%s1125_s2 + $0x98] sm:$0xff] }
  0x27   :  { %720 = vmatpush3.bf16.msra.mxu0 %v717_v24  ;;  %748 = vmatpush3.bf16.msra.mxu1 %v717_v24 }
  0x28   :  { %722 = vmatprep.subr.bf16.mxu0 %v721_v29  ;;  %741 = vmatprep.subr.bf16.mxu1 %v721_v29 }
  0x29   :  { %127 = vperm.xlu1 %760, %v50_v22   ;;  %79 = vperm.xlu0 %759, %v34_v23  }
  0x2b   :  { %724 = vmatpush3.bf16.msra.mxu0 %v721_v29  ;;  %749 = vmatpush3.bf16.msra.mxu1 %v721_v29  ;;  %v239_v29 = vld [vmem:[%s1125_s2] sm:$0xff] }
  0x2c   :  { %726 = vmatprep.subr.bf16.mxu0 %v725_v34  ;;  %742 = vmatprep.subr.bf16.mxu1 %v725_v34 }
  0x2d   :  { %130 = vperm.xlu1 %760, %v51_v27   ;;  %82 = vperm.xlu0 %759, %v35_v28   ;;  %v240_v28 = vld [vmem:[%s1125_s2 + $0x8] sm:$0xff] }
  0x2f   :  { %728 = vmatpush3.bf16.msra.mxu0 %v725_v34  ;;  %750 = vmatpush3.bf16.msra.mxu1 %v725_v34  ;;  %v256_v34 = vld [vmem:[%s1125_s2 + $0x88] sm:$0xff] }
  0x30   :  { %730 = vmatprep.subr.bf16.mxu0 %v729_v39  ;;  %743 = vmatprep.subr.bf16.mxu1 %v729_v39 }
  0x31   :  { %133 = vperm.xlu1 %760, %v52_v32   ;;  %85 = vperm.xlu0 %759, %v36_v33  }
  0x33   :  { %732 = vmatpush3.bf16.msra.mxu0 %v729_v39  ;;  %751 = vmatpush3.bf16.msra.mxu1 %v729_v39 }
  0x34   :  { %734 = vmatprep.subr.bf16.mxu0 %v733_v44  ;;  %744 = vmatprep.subr.bf16.mxu1 %v733_v44 }
  0x35   :  { %136 = vperm.xlu1 %760, %v53_v37   ;;  %88 = vperm.xlu0 %759, %v37_v38  }
  0x37   :  { %736 = vmatpush3.bf16.msra.mxu0 %v733_v44  ;;  %752 = vmatpush3.bf16.msra.mxu1 %v733_v44 }
  0x39   :  { %139 = vperm.xlu1 %760, %v54_v42   ;;  %91 = vperm.xlu0 %759, %v38_v43   ;;  %v241_v42 = vld [vmem:[%s1125_s2 + $0x10] sm:$0xff] }
  0x3a   :  { %v257_v43 = vld [vmem:[%s1125_s2 + $0x90] sm:$0xff] }
  0x3d   :  { %142 = vperm.xlu1 %760, %v55_v45   ;;  %94 = vperm.xlu0 %759, %v39_v46  }
  0x41   :  { %145 = vperm.xlu1 %760, %v56_v47   ;;  %97 = vperm.xlu0 %759, %v40_v48  }
  0x45   :  { %148 = vperm.xlu1 %760, %v57_v49   ;;  %100 = vperm.xlu0 %759, %v41_v50  }
  0x49   :  { %151 = vperm.xlu1 %760, %v58_v51   ;;  %103 = vperm.xlu0 %759, %v42_v52   ;;  %v244_v52 = vld [vmem:[%s1125_s2 + $0x28] sm:$0xff] }
  0x4d   :  { %154 = vperm.xlu1 %760, %v59_v53   ;;  %106 = vperm.xlu0 %759, %v43_v54   ;;  %v260_v53 = vld [vmem:[%s1125_s2 + $0xa8] sm:$0xff]  ;;  %v243_v54 = vld [vmem:[%s1125_s2 + $0x20] sm:$0xff] }
  0x51   :  { %157 = vperm.xlu1 %760, %v60_v55   ;;  %109 = vperm.xlu0 %759, %v44_v56   ;;  %v259_v55 = vld [vmem:[%s1125_s2 + $0xa0] sm:$0xff] }
  0x94   :  { %v68_v59 = vpop.permute.xlu1 %67  ;;  %v65_v60 = vpop.permute.xlu0 %64 }
  0x95   :  { %vm160_vm0 = vcmp.eq.s32.totalorder %v946_v58, %v68_v59  ;;  %vm159_vm1 = vcmp.eq.s32.totalorder %v946_v58, %v65_v60 }
  0x96   :  { %657 = vmatprep.mubr.msk.f32.mxu0 %vm159_vm1, %v813_v61 }
  0x97   :  { %658 = vmatmul.mubr.msk.f32.vlgmr.msra.gmra.mrb[0].mxu0 %vm160_vm0, %v813_v61 }
  0x98   :  { %v116_v62 = vpop.permute.xlu1 %115  ;;  %v113_v63 = vpop.permute.xlu0 %112 }
  0x99   :  { %vm176_vm2 = vcmp.eq.s32.totalorder %v946_v58, %v116_v62  ;;  %vm175_vm3 = vcmp.eq.s32.totalorder %v946_v58, %v113_v63 }
  0x9a   :  { %681 = vmatprep.mubr.msk.f32.mxu1 %vm175_vm3, %v813_v61 }
  0x9b   :  { %682 = vmatmul.mubr.msk.f32.vlgmr.msra.gmra.mrb[0].mxu1 %vm176_vm2, %v813_v61 }
  0x9c   :  { %v119_v0 = vpop.permute.xlu1 %118  ;;  %v71_v1 = vpop.permute.xlu0 %70 }
  0x9d   :  { %vm177_vm4 = vcmp.eq.s32.totalorder %v946_v58, %v119_v0  ;;  %vm161_vm5 = vcmp.eq.s32.totalorder %v946_v58, %v71_v1  ;;  %v246_v0 = vld [vmem:[%s1125_s2 + $0x38] sm:$0xff] }
  0x9e   :  { %660 = vmatprep.mubr.msk.f32.mxu0 %vm161_vm5, %v813_v61  ;;  %684 = vmatprep.mubr.msk.f32.mxu1 %vm177_vm4, %v813_v61  ;;  %v262_v1 = vld [vmem:[%s1125_s2 + $0xb8] sm:$0xff] }
  0xa0   :  { %v122_v2 = vpop.permute.xlu1 %121  ;;  %v74_v3 = vpop.permute.xlu0 %73 }
  0xa1   :  { %vm178_vm6 = vcmp.eq.s32.totalorder %v946_v58, %v122_v2  ;;  %vm162_vm7 = vcmp.eq.s32.totalorder %v946_v58, %v74_v3  ;;  %v245_v2 = vld [vmem:[%s1125_s2 + $0x30] sm:$0xff] }
  0xa2   :  { %661 = vmatmul.mubr.msk.f32.gmra.mrb[2].mxu0 %vm162_vm7, %v813_v61  ;;  %685 = vmatmul.mubr.msk.f32.gmra.mrb[2].mxu1 %vm178_vm6, %v813_v61  ;;  %v261_v3 = vld [vmem:[%s1125_s2 + $0xb0] sm:$0xff] }
  0xa4   :  { %v125_v4 = vpop.permute.xlu1 %124  ;;  %v77_v5 = vpop.permute.xlu0 %76 }
  0xa5   :  { %vm179_vm8 = vcmp.eq.s32.totalorder %v946_v58, %v125_v4  ;;  %vm163_vm9 = vcmp.eq.s32.totalorder %v946_v58, %v77_v5 }
  0xa6   :  { %663 = vmatprep.mubr.msk.f32.mxu0 %vm163_vm9, %v813_v61  ;;  %687 = vmatprep.mubr.msk.f32.mxu1 %vm179_vm8, %v813_v61 }
  0xa8   :  { %v128_v6 = vpop.permute.xlu1 %127  ;;  %v80_v7 = vpop.permute.xlu0 %79 }
  0xa9   :  { %vm180_vm10 = vcmp.eq.s32.totalorder %v946_v58, %v128_v6  ;;  %vm164_vm11 = vcmp.eq.s32.totalorder %v946_v58, %v80_v7 }
  0xaa   :  { %664 = vmatmul.mubr.msk.f32.gmra.mrb[4].mxu0 %vm164_vm11, %v813_v61  ;;  %688 = vmatmul.mubr.msk.f32.gmra.mrb[4].mxu1 %vm180_vm10, %v813_v61 }
  0xac   :  { %v131_v8 = vpop.permute.xlu1 %130  ;;  %v83_v9 = vpop.permute.xlu0 %82 }
  0xad   :  { %vm181_vm12 = vcmp.eq.s32.totalorder %v946_v58, %v131_v8  ;;  %vm165_vm13 = vcmp.eq.s32.totalorder %v946_v58, %v83_v9 }
  0xae   :  { %666 = vmatprep.mubr.msk.f32.mxu0 %vm165_vm13, %v813_v61  ;;  %690 = vmatprep.mubr.msk.f32.mxu1 %vm181_vm12, %v813_v61 }
  0xb0   :  { %v134_v10 = vpop.permute.xlu1 %133  ;;  %v86_v11 = vpop.permute.xlu0 %85 }
  0xb1   :  { %vm182_vm14 = vcmp.eq.s32.totalorder %v946_v58, %v134_v10  ;;  %vm166_vm15 = vcmp.eq.s32.totalorder %v946_v58, %v86_v11 }
  0xb2   :  { %667 = vmatmul.mubr.msk.f32.gmra.mrb[6].mxu0 %vm166_vm15, %v813_v61  ;;  %691 = vmatmul.mubr.msk.f32.gmra.mrb[6].mxu1 %vm182_vm14, %v813_v61 }
  0xb4   :  { %v137_v12 = vpop.permute.xlu1 %136  ;;  %v89_v13 = vpop.permute.xlu0 %88 }
  0xb5   :  { %vm183_vm0 = vcmp.eq.s32.totalorder %v946_v58, %v137_v12  ;;  %vm167_vm1 = vcmp.eq.s32.totalorder %v946_v58, %v89_v13  ;;  %v248_v12 = vld [vmem:[%s1125_s2 + $0x48] sm:$0xff] }
  0xb6   :  { %669 = vmatprep.mubr.msk.f32.mxu0 %vm167_vm1, %v813_v61  ;;  %693 = vmatprep.mubr.msk.f32.mxu1 %vm183_vm0, %v813_v61  ;;  %v264_v13 = vld [vmem:[%s1125_s2 + $0xc8] sm:$0xff] }
  0xb8   :  { %v140_v14 = vpop.permute.xlu1 %139  ;;  %v92_v15 = vpop.permute.xlu0 %91 }
  0xb9   :  { %vm184_vm2 = vcmp.eq.s32.totalorder %v946_v58, %v140_v14  ;;  %vm168_vm3 = vcmp.eq.s32.totalorder %v946_v58, %v92_v15  ;;  %v247_v14 = vld [vmem:[%s1125_s2 + $0x40] sm:$0xff] }
  0xba   :  { %670 = vmatmul.mubr.msk.f32.gmra.mrb[8].mxu0 %vm168_vm3, %v813_v61  ;;  %694 = vmatmul.mubr.msk.f32.gmra.mrb[8].mxu1 %vm184_vm2, %v813_v61  ;;  %v263_v15 = vld [vmem:[%s1125_s2 + $0xc0] sm:$0xff] }
  0xbc   :  { %v143_v16 = vpop.permute.xlu1 %142  ;;  %v95_v17 = vpop.permute.xlu0 %94 }
  0xbd   :  { %vm185_vm4 = vcmp.eq.s32.totalorder %v946_v58, %v143_v16  ;;  %vm169_vm5 = vcmp.eq.s32.totalorder %v946_v58, %v95_v17 }
  0xbe   :  { %672 = vmatprep.mubr.msk.f32.mxu0 %vm169_vm5, %v813_v61  ;;  %696 = vmatprep.mubr.msk.f32.mxu1 %vm185_vm4, %v813_v61 }
  0xc0   :  { %v146_v18 = vpop.permute.xlu1 %145  ;;  %v98_v19 = vpop.permute.xlu0 %97 }
  0xc1   :  { %vm186_vm6 = vcmp.eq.s32.totalorder %v946_v58, %v146_v18  ;;  %vm170_vm7 = vcmp.eq.s32.totalorder %v946_v58, %v98_v19 }
  0xc2   :  { %673 = vmatmul.mubr.msk.f32.gmra.mrb[10].mxu0 %vm170_vm7, %v813_v61  ;;  %697 = vmatmul.mubr.msk.f32.gmra.mrb[10].mxu1 %vm186_vm6, %v813_v61 }
  0xc4   :  { %v149_v20 = vpop.permute.xlu1 %148  ;;  %v101_v21 = vpop.permute.xlu0 %100 }
  0xc5   :  { %vm187_vm8 = vcmp.eq.s32.totalorder %v946_v58, %v149_v20  ;;  %vm171_vm9 = vcmp.eq.s32.totalorder %v946_v58, %v101_v21 }
  0xc6   :  { %675 = vmatprep.mubr.msk.f32.mxu0 %vm171_vm9, %v813_v61  ;;  %699 = vmatprep.mubr.msk.f32.mxu1 %vm187_vm8, %v813_v61 }
  0xc8   :  { %v152_v22 = vpop.permute.xlu1 %151  ;;  %v104_v23 = vpop.permute.xlu0 %103 }
  0xc9   :  { %vm188_vm10 = vcmp.eq.s32.totalorder %v946_v58, %v152_v22  ;;  %vm172_vm11 = vcmp.eq.s32.totalorder %v946_v58, %v104_v23 }
  0xca   :  { %676 = vmatmul.mubr.msk.f32.gmra.mrb[12].mxu0 %vm172_vm11, %v813_v61  ;;  %700 = vmatmul.mubr.msk.f32.gmra.mrb[12].mxu1 %vm188_vm10, %v813_v61 }
  0xcc   :  { %v155_v24 = vpop.permute.xlu1 %154  ;;  %v107_v25 = vpop.permute.xlu0 %106 }
  0xcd   :  { %vm189_vm12 = vcmp.eq.s32.totalorder %v946_v58, %v155_v24  ;;  %vm173_vm13 = vcmp.eq.s32.totalorder %v946_v58, %v107_v25  ;;  %v250_v24 = vld [vmem:[%s1125_s2 + $0x58] sm:$0xff] }
  0xce   :  { %678 = vmatprep.mubr.msk.f32.mxu0 %vm173_vm13, %v813_v61  ;;  %702 = vmatprep.mubr.msk.f32.mxu1 %vm189_vm12, %v813_v61  ;;  %v266_v25 = vld [vmem:[%s1125_s2 + $0xd8] sm:$0xff] }
  0xd0   :  { %v158_v26 = vpop.permute.xlu1 %157  ;;  %v110_v27 = vpop.permute.xlu0 %109 }
  0xd1   :  { %vm190_vm14 = vcmp.eq.s32.totalorder %v946_v58, %v158_v26  ;;  %vm174_vm15 = vcmp.eq.s32.totalorder %v946_v58, %v110_v27  ;;  %v249_v26 = vld [vmem:[%s1125_s2 + $0x50] sm:$0xff] }
  0xd2   :  { %679 = vmatmul.mubr.msk.f32.gmra.mrb[14].mxu0 %vm174_vm15, %v813_v61  ;;  %703 = vmatmul.mubr.msk.f32.gmra.mrb[14].mxu1 %vm190_vm14, %v813_v61  ;;  %v265_v27 = vld [vmem:[%s1125_s2 + $0xd0] sm:$0xff] }
 0x16a   :  { %v659_v30 = vpop.f32.mrb[0].mxu0 }
 0x16b   :  { %v343_v31 = vadd.f32 %v659_v30, %v240_v28  ;;  %v337_v32 = vpop.f32.mrb[1].mxu0 }
 0x16c   :  { %v338_v33 = vadd.f32 %v337_v32, %v239_v29 }
 0x16d   :  { %497 = vst [vmem:[#allocation5 + $0x8] sm:$0xff] %v343_v31 }
 0x16e   :  { %496 = vst [vmem:[#allocation5] sm:$0xff] %v338_v33  ;;  %v683_v36 = vpop.f32.mrb[0].mxu1 }
 0x16f   :  { %v423_v37 = vadd.f32 %v683_v36, %v256_v34  ;;  %v417_v38 = vpop.f32.mrb[1].mxu1  ;;  %v252_v36 = vld [vmem:[%s1125_s2 + $0x68] sm:$0xff] }
 0x170   :  { %v418_v39 = vadd.f32 %v417_v38, %v255_v35  ;;  %v251_v38 = vld [vmem:[%s1125_s2 + $0x60] sm:$0xff] }
 0x171   :  { %513 = vst [vmem:[#allocation5 + $0x88] sm:$0xff] %v423_v37  ;;  %v268_v37 = vld [vmem:[%s1125_s2 + $0xe8] sm:$0xff] }
 0x172   :  { %512 = vst [vmem:[#allocation5 + $0x80] sm:$0xff] %v418_v39  ;;  %v267_v39 = vld [vmem:[%s1125_s2 + $0xe0] sm:$0xff] }
 0x175   :  { %v662_v44 = vpop.f32.mrb[2].mxu0  ;;  %v686_v45 = vpop.f32.mrb[2].mxu1 }
 0x176   :  { %v353_v46 = vadd.f32 %v662_v44, %v242_v40  ;;  %v433_v47 = vadd.f32 %v686_v45, %v258_v41  ;;  %v347_v48 = vpop.f32.mrb[3].mxu0  ;;  %v427_v49 = vpop.f32.mrb[3].mxu1 }
 0x177   :  { %v348_v50 = vadd.f32 %v347_v48, %v241_v42  ;;  %v428_v51 = vadd.f32 %v427_v49, %v257_v43  ;;  %v254_v48 = vld [vmem:[%s1125_s2 + $0x78] sm:$0xff] }
 0x178   :  { %499 = vst [vmem:[#allocation5 + $0x18] sm:$0xff] %v353_v46  ;;  %515 = vst [vmem:[#allocation5 + $0x98] sm:$0xff] %v433_v47  ;;  %v270_v49 = vld [vmem:[%s1125_s2 + $0xf8] sm:$0xff] }
 0x179   :  { %498 = vst [vmem:[#allocation5 + $0x10] sm:$0xff] %v348_v50  ;;  %514 = vst [vmem:[#allocation5 + $0x90] sm:$0xff] %v428_v51  ;;  %v253_v50 = vld [vmem:[%s1125_s2 + $0x70] sm:$0xff] }
 0x17a   :  { %v269_v51 = vld [vmem:[%s1125_s2 + $0xf0] sm:$0xff] }
 0x17d   :  { %v665_v56 = vpop.f32.mrb[4].mxu0  ;;  %v689_v57 = vpop.f32.mrb[4].mxu1 }
 0x17e   :  { %v363_v58 = vadd.f32 %v665_v56, %v244_v52  ;;  %v443_v59 = vadd.f32 %v689_v57, %v260_v53  ;;  %v357_v60 = vpop.f32.mrb[5].mxu0  ;;  %v437_v61 = vpop.f32.mrb[5].mxu1 }
 0x17f   :  { %v358_v62 = vadd.f32 %v357_v60, %v243_v54  ;;  %v438_v63 = vadd.f32 %v437_v61, %v259_v55 }
 0x180   :  { %501 = vst [vmem:[#allocation5 + $0x28] sm:$0xff] %v363_v58  ;;  %517 = vst [vmem:[#allocation5 + $0xa8] sm:$0xff] %v443_v59 }
 0x181   :  { %500 = vst [vmem:[#allocation5 + $0x20] sm:$0xff] %v358_v62  ;;  %516 = vst [vmem:[#allocation5 + $0xa0] sm:$0xff] %v438_v63 }
 0x185   :  { %v668_v4 = vpop.f32.mrb[6].mxu0  ;;  %v692_v5 = vpop.f32.mrb[6].mxu1 }
 0x186   :  { %v373_v6 = vadd.f32 %v668_v4, %v246_v0  ;;  %v453_v7 = vadd.f32 %v692_v5, %v262_v1  ;;  %v367_v8 = vpop.f32.mrb[7].mxu0  ;;  %v447_v9 = vpop.f32.mrb[7].mxu1 }
 0x187   :  { %v368_v10 = vadd.f32 %v367_v8, %v245_v2  ;;  %v448_v11 = vadd.f32 %v447_v9, %v261_v3 }
 0x188   :  { %503 = vst [vmem:[#allocation5 + $0x38] sm:$0xff] %v373_v6  ;;  %519 = vst [vmem:[#allocation5 + $0xb8] sm:$0xff] %v453_v7 }
 0x189   :  { %502 = vst [vmem:[#allocation5 + $0x30] sm:$0xff] %v368_v10  ;;  %518 = vst [vmem:[#allocation5 + $0xb0] sm:$0xff] %v448_v11 }
 0x18d   :  { %v671_v16 = vpop.f32.mrb[8].mxu0  ;;  %v695_v17 = vpop.f32.mrb[8].mxu1 }
 0x18e   :  { %v383_v18 = vadd.f32 %v671_v16, %v248_v12  ;;  %v463_v19 = vadd.f32 %v695_v17, %v264_v13  ;;  %v377_v20 = vpop.f32.mrb[9].mxu0  ;;  %v457_v21 = vpop.f32.mrb[9].mxu1 }
 0x18f   :  { %v378_v22 = vadd.f32 %v377_v20, %v247_v14  ;;  %v458_v23 = vadd.f32 %v457_v21, %v263_v15 }
 0x190   :  { %505 = vst [vmem:[#allocation5 + $0x48] sm:$0xff] %v383_v18  ;;  %521 = vst [vmem:[#allocation5 + $0xc8] sm:$0xff] %v463_v19 }
 0x191   :  { %504 = vst [vmem:[#allocation5 + $0x40] sm:$0xff] %v378_v22  ;;  %520 = vst [vmem:[#allocation5 + $0xc0] sm:$0xff] %v458_v23 }
 0x195   :  { %v674_v28 = vpop.f32.mrb[10].mxu0  ;;  %v698_v29 = vpop.f32.mrb[10].mxu1 }
 0x196   :  { %v393_v30 = vadd.f32 %v674_v28, %v250_v24  ;;  %v473_v31 = vadd.f32 %v698_v29, %v266_v25  ;;  %v387_v32 = vpop.f32.mrb[11].mxu0  ;;  %v467_v33 = vpop.f32.mrb[11].mxu1 }
 0x197   :  { %v388_v34 = vadd.f32 %v387_v32, %v249_v26  ;;  %v468_v35 = vadd.f32 %v467_v33, %v265_v27 }
 0x198   :  { %507 = vst [vmem:[#allocation5 + $0x58] sm:$0xff] %v393_v30  ;;  %523 = vst [vmem:[#allocation5 + $0xd8] sm:$0xff] %v473_v31 }
 0x199   :  { %506 = vst [vmem:[#allocation5 + $0x50] sm:$0xff] %v388_v34  ;;  %522 = vst [vmem:[#allocation5 + $0xd0] sm:$0xff] %v468_v35 }
 0x19d   :  { %v677_v40 = vpop.f32.mrb[12].mxu0  ;;  %v701_v41 = vpop.f32.mrb[12].mxu1 }
 0x19e   :  { %v403_v42 = vadd.f32 %v677_v40, %v252_v36  ;;  %v483_v43 = vadd.f32 %v701_v41, %v268_v37  ;;  %v397_v44 = vpop.f32.mrb[13].mxu0  ;;  %v477_v45 = vpop.f32.mrb[13].mxu1 }
 0x19f   :  { %v398_v46 = vadd.f32 %v397_v44, %v251_v38  ;;  %v478_v47 = vadd.f32 %v477_v45, %v267_v39 }
 0x1a0   :  { %509 = vst [vmem:[#allocation5 + $0x68] sm:$0xff] %v403_v42  ;;  %525 = vst [vmem:[#allocation5 + $0xe8] sm:$0xff] %v483_v43 }
 0x1a1   :  { %508 = vst [vmem:[#allocation5 + $0x60] sm:$0xff] %v398_v46  ;;  %524 = vst [vmem:[#allocation5 + $0xe0] sm:$0xff] %v478_v47 }
 0x1a5   :  { %v680_v52 = vpop.f32.mrb[14].mxu0  ;;  %v704_v53 = vpop.f32.mrb[14].mxu1 }
 0x1a6   :  { %v413_v54 = vadd.f32 %v680_v52, %v254_v48  ;;  %v493_v55 = vadd.f32 %v704_v53, %v270_v49  ;;  %v407_v56 = vpop.f32.mrb[15].mxu0  ;;  %v487_v57 = vpop.f32.mrb[15].mxu1 }
 0x1a7   :  { %v408_v58 = vadd.f32 %v407_v56, %v253_v50  ;;  %v488_v59 = vadd.f32 %v487_v57, %v269_v51 }
 0x1a8   :  { %511 = vst [vmem:[#allocation5 + $0x78] sm:$0xff] %v413_v54  ;;  %527 = vst [vmem:[#allocation5 + $0xf8] sm:$0xff] %v493_v55 }
 0x1a9   :  { %510 = vst [vmem:[#allocation5 + $0x70] sm:$0xff] %v408_v58  ;;  %526 = vst [vmem:[#allocation5 + $0xf0] sm:$0xff] %v488_v59 }
 0x1aa   :  { %794 = shalt.err (!%p791_p12)
}
 0x1ab   :  { %s795_s25 = scalar_lea.hbm %s1126_s3, 4096 }
 0x1ac   :  { %p796_p13 = scmp.ne.s32.totalorder %s1126_s3, %s795_s25  ;;  %p799_p0 = scmp.lt.u32.totalorder %s795_s25, %s1126_s3 }
 0x1ae   :  { %p801_p1 = pnand %p799_p0, %p796_p13 }
 0x1b0   :  { %804 = shalt.err (!%p801_p1)
}
 0x1b1   :  { %539 = dma.vmem_to_hbm [thread:$0]  %s534_s20, 4096, %s1126_s3, [#allocation4], %s810_s22, %s810_s22, %s811_s23  }
 0x1b2   :  { %807 = dma.done.wait [#allocation4], 4096  }
 0x1b3   :  { %808 = vsyncadd [#allocation4], 4294963200 }
 0x1b4   :  { %543 = vsyncpa [#allocation3], 1 }
 0x1b5   :  { %544 = vsyncpa [#allocation4], 1 }

// kernel: tpu_custom_call.1
= control target key start
LH: loop header
LB: loop body
LE: loop exit
PB: predicated region body
PF: predicated region fallthrough
CT: control target
= control target key end

     0   :  { %8 = vsyncpa [#allocation3], 0  ;;  %s1123_s0 = inlined_call_operand.vmem [shape: s32[256,1], index: 0, kind: input, shape index: {}]   ;;  %s1124_s1 = inlined_call_operand.hbm [shape: f32[128,128], index: 1, kind: input, shape index: {}]   ;;  %s1125_s2 = inlined_call_operand.vmem [shape: f32[256,128], index: 2, kind: input, shape index: {}]   ;;  %s1126_s3 = inlined_call_operand.hbm [shape: f32[256,128], index: 3, kind: output, shape index: {}]  }
   0x1   :  { %9 = vsyncpa [#allocation4], 0  ;;  %s809_s12 = smov [#allocation2]   ;;  %s761_s16 = scalar_lea.hbm %s1124_s1, 2048 }
   0x2   :  { %s17_s13 = sshll.u32 %s809_s12, 4  ;;  %p762_p0 = scmp.ne.s32.totalorder %s1124_s1, %s761_s16  ;;  %s18_s13 = int_to_ptr.vmem [resolvable:$true] %s17_s13 }
   0x3   :  { %p765_p1 = scmp.lt.u32.totalorder %s761_s16, %s1124_s1 }
   0x5   :  { %p767_p2 = pnand %p765_p1, %p762_p0 }
   0x7   :  { %770 = shalt.err (!%p767_p2)
}
   0x8   :  { %s771_s21 = scalar_lea.vmem %s18_s13, 2048  ;;  %p776_p4 = scmp.lt.s32.totalorder %s18_s13, %s18_s13 }
   0x9   :  { %p772_p3 = scmp.ne.s32.totalorder %s18_s13, %s771_s21  ;;  %p777_p5 = scmp.lt.s32.totalorder %s771_s21, %s771_s21 }
   0xb   :  { %p778_p6 = por %p777_p5, %p776_p4 }
   0xd   :  { %p779_p7 = pnand %p778_p6, %p772_p3 }
   0xf   :  { %782 = shalt.err (!%p779_p7)
}
  0x10   :  { %s810_s22 = smov 128   ;;  %s811_s23 = smov 8  }
  0x11   :  { %23 = dma.hbm_to_vmem [thread:$0]  %s1124_s1, 2048, %s18_s13, [#allocation3], %s810_s22, %s810_s22, %s811_s23  }
  0x12   :  { %805 = dma.done.wait [#allocation3], 2048  }
  0x13   :  { %806 = vsyncadd [#allocation3], 4294965248  ;;  %v812_v0 = vmov 0   ;;  %v30_v1 = vld [vmem:[%s1123_s0 + $0x8] sm:$0xff]  ;;  %v29_v2 = vld [vmem:[%s1123_s0] sm:$0xff]  ;;  %v61_v57 = vlaneseq  ;;  %v813_v61 = vmov 1.0  }
  0x14   :  { %760 = vset.pattern.permute.xlu1 %v812_v0  ;;  %759 = vset.pattern.permute.xlu0 %v812_v0  ;;  %v46_v3 = vld [vmem:[%s1123_s0 + $0x88] sm:$0xff]  ;;  %v45_v4 = vld [vmem:[%s1123_s0 + $0x80] sm:$0xff]  ;;  %v47_v5 = vld [vmem:[%s1123_s0 + $0x90] sm:$0xff]  ;;  %s814_s19 = smov [#allocation5]  }
  0x15   :  { %67 = vperm.xlu1 %760, %v30_v1   ;;  %64 = vperm.xlu0 %759, %v29_v2   ;;  %v31_v6 = vld [vmem:[%s1123_s0 + $0x10] sm:$0xff]  ;;  %v48_v7 = vld [vmem:[%s1123_s0 + $0x98] sm:$0xff]  ;;  %v223_v9 = vld [vmem:[#allocation2] sm:$0xff]  ;;  %v946_v58 = vand.u32 127, %v61_v57  ;;  %s533_s20 = sshll.u32 %s814_s19, 4  ;;  %s534_s20 = int_to_ptr.vmem [resolvable:$true] %s533_s20 }
  0x16   :  { %v32_v8 = vld [vmem:[%s1123_s0 + $0x18] sm:$0xff]  ;;  %v224_v10 = vld [vmem:[#allocation2 + $0x8] sm:$0xff]  ;;  %v225_v11 = vld [vmem:[#allocation2 + $0x10] sm:$0xff]  ;;  %s783_s21 = scalar_lea.vmem %s534_s20, 4096  ;;  %p788_p9 = scmp.lt.s32.totalorder %s534_s20, %s534_s20 }
  0x17   :  { %v226_v12 = vld [vmem:[#allocation2 + $0x18] sm:$0xff]  ;;  %v705_v13 = vpack.c.bf16 %v224_v10, %v223_v9  ;;  %v227_v15 = vld [vmem:[#allocation2 + $0x20] sm:$0xff]  ;;  %v228_v16 = vld [vmem:[#allocation2 + $0x28] sm:$0xff]  ;;  %p784_p8 = scmp.ne.s32.totalorder %s534_s20, %s783_s21  ;;  %p789_p10 = scmp.lt.s32.totalorder %s783_s21, %s783_s21 }
  0x18   :  { %v709_v14 = vpack.c.bf16 %v226_v12, %v225_v11  ;;  %v49_v17 = vld [vmem:[%s1123_s0 + $0xa0] sm:$0xff]  ;;  %v713_v19 = vpack.c.bf16 %v228_v16, %v227_v15  ;;  %v229_v20 = vld [vmem:[#allocation2 + $0x30] sm:$0xff]  ;;  %v230_v21 = vld [vmem:[#allocation2 + $0x38] sm:$0xff] }
  0x19   :  { %115 = vperm.xlu1 %760, %v46_v3   ;;  %112 = vperm.xlu0 %759, %v45_v4   ;;  %v33_v18 = vld [vmem:[%s1123_s0 + $0x20] sm:$0xff]  ;;  %v50_v22 = vld [vmem:[%s1123_s0 + $0xa8] sm:$0xff]  ;;  %v717_v24 = vpack.c.bf16 %v230_v21, %v229_v20  ;;  %v51_v27 = vld [vmem:[%s1123_s0 + $0xb0] sm:$0xff]  ;;  %p790_p11 = por %p789_p10, %p788_p9 }
  0x1a   :  { %706 = vmatprep.subr.bf16.mxu0 %v705_v13  ;;  %737 = vmatprep.subr.bf16.mxu1 %v705_v13  ;;  %v34_v23 = vld [vmem:[%s1123_s0 + $0x28] sm:$0xff]  ;;  %v231_v25 = vld [vmem:[#allocation2 + $0x40] sm:$0xff]  ;;  %v35_v28 = vld [vmem:[%s1123_s0 + $0x30] sm:$0xff] }
  0x1b   :  { %708 = vmatpush3.bf16.msra.mxu0 %v705_v13  ;;  %745 = vmatpush3.bf16.msra.mxu1 %v705_v13  ;;  %v232_v26 = vld [vmem:[#allocation2 + $0x48] sm:$0xff]  ;;  %v233_v30 = vld [vmem:[#allocation2 + $0x50] sm:$0xff]  ;;  %v234_v31 = vld [vmem:[#allocation2 + $0x58] sm:$0xff]  ;;  %p791_p12 = pnand %p790_p11, %p784_p8 }
  0x1c   :  { %710 = vmatprep.subr.bf16.mxu0 %v709_v14  ;;  %738 = vmatprep.subr.bf16.mxu1 %v709_v14  ;;  %v721_v29 = vpack.c.bf16 %v232_v26, %v231_v25  ;;  %v52_v32 = vld [vmem:[%s1123_s0 + $0xb8] sm:$0xff]  ;;  %v725_v34 = vpack.c.bf16 %v234_v31, %v233_v30  ;;  %v235_v35 = vld [vmem:[#allocation2 + $0x60] sm:$0xff]  ;;  %v236_v36 = vld [vmem:[#allocation2 + $0x68] sm:$0xff] }
  0x1d   :  { %118 = vperm.xlu1 %760, %v47_v5   ;;  %70 = vperm.xlu0 %759, %v31_v6   ;;  %v36_v33 = vld [vmem:[%s1123_s0 + $0x38] sm:$0xff]  ;;  %v53_v37 = vld [vmem:[%s1123_s0 + $0xc0] sm:$0xff]  ;;  %v729_v39 = vpack.c.bf16 %v236_v36, %v235_v35  ;;  %v237_v40 = vld [vmem:[#allocation2 + $0x70] sm:$0xff] }
  0x1e   :  { %v37_v38 = vld [vmem:[%s1123_s0 + $0x40] sm:$0xff]  ;;  %v238_v41 = vld [vmem:[#allocation2 + $0x78] sm:$0xff]  ;;  %v54_v42 = vld [vmem:[%s1123_s0 + $0xc8] sm:$0xff] }
  0x1f   :  { %712 = vmatpush3.bf16.msra.mxu0 %v709_v14  ;;  %746 = vmatpush3.bf16.msra.mxu1 %v709_v14  ;;  %v38_v43 = vld [vmem:[%s1123_s0 + $0x48] sm:$0xff]  ;;  %v733_v44 = vpack.c.bf16 %v238_v41, %v237_v40  ;;  %v55_v45 = vld [vmem:[%s1123_s0 + $0xd0] sm:$0xff]  ;;  %v56_v47 = vld [vmem:[%s1123_s0 + $0xd8] sm:$0xff] }
  0x20   :  { %714 = vmatprep.subr.bf16.mxu0 %v713_v19  ;;  %739 = vmatprep.subr.bf16.mxu1 %v713_v19  ;;  %v39_v46 = vld [vmem:[%s1123_s0 + $0x50] sm:$0xff]  ;;  %v40_v48 = vld [vmem:[%s1123_s0 + $0x58] sm:$0xff]  ;;  %v57_v49 = vld [vmem:[%s1123_s0 + $0xe0] sm:$0xff] }
  0x21   :  { %121 = vperm.xlu1 %760, %v48_v7   ;;  %73 = vperm.xlu0 %759, %v32_v8   ;;  %v41_v50 = vld [vmem:[%s1123_s0 + $0x60] sm:$0xff]  ;;  %v58_v51 = vld [vmem:[%s1123_s0 + $0xe8] sm:$0xff]  ;;  %v59_v53 = vld [vmem:[%s1123_s0 + $0xf0] sm:$0xff] }
  0x22   :  { %v42_v52 = vld [vmem:[%s1123_s0 + $0x68] sm:$0xff]  ;;  %v43_v54 = vld [vmem:[%s1123_s0 + $0x70] sm:$0xff]  ;;  %v60_v55 = vld [vmem:[%s1123_s0 + $0xf8] sm:$0xff] }
  0x23   :  { %716 = vmatpush3.bf16.msra.mxu0 %v713_v19  ;;  %747 = vmatpush3.bf16.msra.mxu1 %v713_v19  ;;  %v44_v56 = vld [vmem:[%s1123_s0 + $0x78] sm:$0xff]  ;;  %v255_v35 = vld [vmem:[%s1125_s2 + $0x80] sm:$0xff] }
  0x24   :  { %718 = vmatprep.subr.bf16.mxu0 %v717_v24  ;;  %740 = vmatprep.subr.bf16.mxu1 %v717_v24  ;;  %v242_v40 = vld [vmem:[%s1125_s2 + $0x18] sm:$0xff] }
  0x25   :  { %124 = vperm.xlu1 %760, %v49_v17   ;;  %76 = vperm.xlu0 %759, %v33_v18   ;;  %v258_v41 = vld [vmem:[%s1125_s2 + $0x98] sm:$0xff] }
  0x27   :  { %720 = vmatpush3.bf16.msra.mxu0 %v717_v24  ;;  %748 = vmatpush3.bf16.msra.mxu1 %v717_v24 }
  0x28   :  { %722 = vmatprep.subr.bf16.mxu0 %v721_v29  ;;  %741 = vmatprep.subr.bf16.mxu1 %v721_v29 }
  0x29   :  { %127 = vperm.xlu1 %760, %v50_v22   ;;  %79 = vperm.xlu0 %759, %v34_v23  }
  0x2b   :  { %724 = vmatpush3.bf16.msra.mxu0 %v721_v29  ;;  %749 = vmatpush3.bf16.msra.mxu1 %v721_v29  ;;  %v239_v29 = vld [vmem:[%s1125_s2] sm:$0xff] }
  0x2c   :  { %726 = vmatprep.subr.bf16.mxu0 %v725_v34  ;;  %742 = vmatprep.subr.bf16.mxu1 %v725_v34 }
  0x2d   :  { %130 = vperm.xlu1 %760, %v51_v27   ;;  %82 = vperm.xlu0 %759, %v35_v28   ;;  %v240_v28 = vld [vmem:[%s1125_s2 + $0x8] sm:$0xff] }
  0x2f   :  { %728 = vmatpush3.bf16.msra.mxu0 %v725_v34  ;;  %750 = vmatpush3.bf16.msra.mxu1 %v725_v34  ;;  %v256_v34 = vld [vmem:[%s1125_s2 + $0x88] sm:$0xff] }
  0x30   :  { %730 = vmatprep.subr.bf16.mxu0 %v729_v39  ;;  %743 = vmatprep.subr.bf16.mxu1 %v729_v39 }
  0x31   :  { %133 = vperm.xlu1 %760, %v52_v32   ;;  %85 = vperm.xlu0 %759, %v36_v33  }
  0x33   :  { %732 = vmatpush3.bf16.msra.mxu0 %v729_v39  ;;  %751 = vmatpush3.bf16.msra.mxu1 %v729_v39 }
  0x34   :  { %734 = vmatprep.subr.bf16.mxu0 %v733_v44  ;;  %744 = vmatprep.subr.bf16.mxu1 %v733_v44 }
  0x35   :  { %136 = vperm.xlu1 %760, %v53_v37   ;;  %88 = vperm.xlu0 %759, %v37_v38  }
  0x37   :  { %736 = vmatpush3.bf16.msra.mxu0 %v733_v44  ;;  %752 = vmatpush3.bf16.msra.mxu1 %v733_v44 }
  0x39   :  { %139 = vperm.xlu1 %760, %v54_v42   ;;  %91 = vperm.xlu0 %759, %v38_v43   ;;  %v241_v42 = vld [vmem:[%s1125_s2 + $0x10] sm:$0xff] }
  0x3a   :  { %v257_v43 = vld [vmem:[%s1125_s2 + $0x90] sm:$0xff] }
  0x3d   :  { %142 = vperm.xlu1 %760, %v55_v45   ;;  %94 = vperm.xlu0 %759, %v39_v46  }
  0x41   :  { %145 = vperm.xlu1 %760, %v56_v47   ;;  %97 = vperm.xlu0 %759, %v40_v48  }
  0x45   :  { %148 = vperm.xlu1 %760, %v57_v49   ;;  %100 = vperm.xlu0 %759, %v41_v50  }
  0x49   :  { %151 = vperm.xlu1 %760, %v58_v51   ;;  %103 = vperm.xlu0 %759, %v42_v52   ;;  %v244_v52 = vld [vmem:[%s1125_s2 + $0x28] sm:$0xff] }
  0x4d   :  { %154 = vperm.xlu1 %760, %v59_v53   ;;  %106 = vperm.xlu0 %759, %v43_v54   ;;  %v260_v53 = vld [vmem:[%s1125_s2 + $0xa8] sm:$0xff]  ;;  %v243_v54 = vld [vmem:[%s1125_s2 + $0x20] sm:$0xff] }
  0x51   :  { %157 = vperm.xlu1 %760, %v60_v55   ;;  %109 = vperm.xlu0 %759, %v44_v56   ;;  %v259_v55 = vld [vmem:[%s1125_s2 + $0xa0] sm:$0xff] }
  0x94   :  { %v68_v59 = vpop.permute.xlu1 %67  ;;  %v65_v60 = vpop.permute.xlu0 %64 }
  0x95   :  { %vm160_vm0 = vcmp.eq.s32.totalorder %v946_v58, %v68_v59  ;;  %vm159_vm1 = vcmp.eq.s32.totalorder %v946_v58, %v65_v60 }
  0x96   :  { %657 = vmatprep.mubr.msk.f32.mxu0 %vm159_vm1, %v813_v61 }
  0x97   :  { %658 = vmatmul.mubr.msk.f32.vlgmr.msra.gmra.mrb[0].mxu0 %vm160_vm0, %v813_v61 }
  0x98   :  { %v116_v62 = vpop.permute.xlu1 %115  ;;  %v113_v63 = vpop.permute.xlu0 %112 }
  0x99   :  { %vm176_vm2 = vcmp.eq.s32.totalorder %v946_v58, %v116_v62  ;;  %vm175_vm3 = vcmp.eq.s32.totalorder %v946_v58, %v113_v63 }
  0x9a   :  { %681 = vmatprep.mubr.msk.f32.mxu1 %vm175_vm3, %v813_v61 }
  0x9b   :  { %682 = vmatmul.mubr.msk.f32.vlgmr.msra.gmra.mrb[0].mxu1 %vm176_vm2, %v813_v61 }
  0x9c   :  { %v119_v0 = vpop.permute.xlu1 %118  ;;  %v71_v1 = vpop.permute.xlu0 %70 }
  0x9d   :  { %vm177_vm4 = vcmp.eq.s32.totalorder %v946_v58, %v119_v0  ;;  %vm161_vm5 = vcmp.eq.s32.totalorder %v946_v58, %v71_v1  ;;  %v246_v0 = vld [vmem:[%s1125_s2 + $0x38] sm:$0xff] }
  0x9e   :  { %660 = vmatprep.mubr.msk.f32.mxu0 %vm161_vm5, %v813_v61  ;;  %684 = vmatprep.mubr.msk.f32.mxu1 %vm177_vm4, %v813_v61  ;;  %v262_v1 = vld [vmem:[%s1125_s2 + $0xb8] sm:$0xff] }
  0xa0   :  { %v122_v2 = vpop.permute.xlu1 %121  ;;  %v74_v3 = vpop.permute.xlu0 %73 }
  0xa1   :  { %vm178_vm6 = vcmp.eq.s32.totalorder %v946_v58, %v122_v2  ;;  %vm162_vm7 = vcmp.eq.s32.totalorder %v946_v58, %v74_v3  ;;  %v245_v2 = vld [vmem:[%s1125_s2 + $0x30] sm:$0xff] }
  0xa2   :  { %661 = vmatmul.mubr.msk.f32.gmra.mrb[2].mxu0 %vm162_vm7, %v813_v61  ;;  %685 = vmatmul.mubr.msk.f32.gmra.mrb[2].mxu1 %vm178_vm6, %v813_v61  ;;  %v261_v3 = vld [vmem:[%s1125_s2 + $0xb0] sm:$0xff] }
  0xa4   :  { %v125_v4 = vpop.permute.xlu1 %124  ;;  %v77_v5 = vpop.permute.xlu0 %76 }
  0xa5   :  { %vm179_vm8 = vcmp.eq.s32.totalorder %v946_v58, %v125_v4  ;;  %vm163_vm9 = vcmp.eq.s32.totalorder %v946_v58, %v77_v5 }
  0xa6   :  { %663 = vmatprep.mubr.msk.f32.mxu0 %vm163_vm9, %v813_v61  ;;  %687 = vmatprep.mubr.msk.f32.mxu1 %vm179_vm8, %v813_v61 }
  0xa8   :  { %v128_v6 = vpop.permute.xlu1 %127  ;;  %v80_v7 = vpop.permute.xlu0 %79 }
  0xa9   :  { %vm180_vm10 = vcmp.eq.s32.totalorder %v946_v58, %v128_v6  ;;  %vm164_vm11 = vcmp.eq.s32.totalorder %v946_v58, %v80_v7 }
  0xaa   :  { %664 = vmatmul.mubr.msk.f32.gmra.mrb[4].mxu0 %vm164_vm11, %v813_v61  ;;  %688 = vmatmul.mubr.msk.f32.gmra.mrb[4].mxu1 %vm180_vm10, %v813_v61 }
  0xac   :  { %v131_v8 = vpop.permute.xlu1 %130  ;;  %v83_v9 = vpop.permute.xlu0 %82 }
  0xad   :  { %vm181_vm12 = vcmp.eq.s32.totalorder %v946_v58, %v131_v8  ;;  %vm165_vm13 = vcmp.eq.s32.totalorder %v946_v58, %v83_v9 }
  0xae   :  { %666 = vmatprep.mubr.msk.f32.mxu0 %vm165_vm13, %v813_v61  ;;  %690 = vmatprep.mubr.msk.f32.mxu1 %vm181_vm12, %v813_v61 }
  0xb0   :  { %v134_v10 = vpop.permute.xlu1 %133  ;;  %v86_v11 = vpop.permute.xlu0 %85 }
  0xb1   :  { %vm182_vm14 = vcmp.eq.s32.totalorder %v946_v58, %v134_v10  ;;  %vm166_vm15 = vcmp.eq.s32.totalorder %v946_v58, %v86_v11 }
  0xb2   :  { %667 = vmatmul.mubr.msk.f32.gmra.mrb[6].mxu0 %vm166_vm15, %v813_v61  ;;  %691 = vmatmul.mubr.msk.f32.gmra.mrb[6].mxu1 %vm182_vm14, %v813_v61 }
  0xb4   :  { %v137_v12 = vpop.permute.xlu1 %136  ;;  %v89_v13 = vpop.permute.xlu0 %88 }
  0xb5   :  { %vm183_vm0 = vcmp.eq.s32.totalorder %v946_v58, %v137_v12  ;;  %vm167_vm1 = vcmp.eq.s32.totalorder %v946_v58, %v89_v13  ;;  %v248_v12 = vld [vmem:[%s1125_s2 + $0x48] sm:$0xff] }
  0xb6   :  { %669 = vmatprep.mubr.msk.f32.mxu0 %vm167_vm1, %v813_v61  ;;  %693 = vmatprep.mubr.msk.f32.mxu1 %vm183_vm0, %v813_v61  ;;  %v264_v13 = vld [vmem:[%s1125_s2 + $0xc8] sm:$0xff] }
  0xb8   :  { %v140_v14 = vpop.permute.xlu1 %139  ;;  %v92_v15 = vpop.permute.xlu0 %91 }
  0xb9   :  { %vm184_vm2 = vcmp.eq.s32.totalorder %v946_v58, %v140_v14  ;;  %vm168_vm3 = vcmp.eq.s32.totalorder %v946_v58, %v92_v15  ;;  %v247_v14 = vld [vmem:[%s1125_s2 + $0x40] sm:$0xff] }
  0xba   :  { %670 = vmatmul.mubr.msk.f32.gmra.mrb[8].mxu0 %vm168_vm3, %v813_v61  ;;  %694 = vmatmul.mubr.msk.f32.gmra.mrb[8].mxu1 %vm184_vm2, %v813_v61  ;;  %v263_v15 = vld [vmem:[%s1125_s2 + $0xc0] sm:$0xff] }
  0xbc   :  { %v143_v16 = vpop.permute.xlu1 %142  ;;  %v95_v17 = vpop.permute.xlu0 %94 }
  0xbd   :  { %vm185_vm4 = vcmp.eq.s32.totalorder %v946_v58, %v143_v16  ;;  %vm169_vm5 = vcmp.eq.s32.totalorder %v946_v58, %v95_v17 }
  0xbe   :  { %672 = vmatprep.mubr.msk.f32.mxu0 %vm169_vm5, %v813_v61  ;;  %696 = vmatprep.mubr.msk.f32.mxu1 %vm185_vm4, %v813_v61 }
  0xc0   :  { %v146_v18 = vpop.permute.xlu1 %145  ;;  %v98_v19 = vpop.permute.xlu0 %97 }
  0xc1   :  { %vm186_vm6 = vcmp.eq.s32.totalorder %v946_v58, %v146_v18  ;;  %vm170_vm7 = vcmp.eq.s32.totalorder %v946_v58, %v98_v19 }
  0xc2   :  { %673 = vmatmul.mubr.msk.f32.gmra.mrb[10].mxu0 %vm170_vm7, %v813_v61  ;;  %697 = vmatmul.mubr.msk.f32.gmra.mrb[10].mxu1 %vm186_vm6, %v813_v61 }
  0xc4   :  { %v149_v20 = vpop.permute.xlu1 %148  ;;  %v101_v21 = vpop.permute.xlu0 %100 }
  0xc5   :  { %vm187_vm8 = vcmp.eq.s32.totalorder %v946_v58, %v149_v20  ;;  %vm171_vm9 = vcmp.eq.s32.totalorder %v946_v58, %v101_v21 }
  0xc6   :  { %675 = vmatprep.mubr.msk.f32.mxu0 %vm171_vm9, %v813_v61  ;;  %699 = vmatprep.mubr.msk.f32.mxu1 %vm187_vm8, %v813_v61 }
  0xc8   :  { %v152_v22 = vpop.permute.xlu1 %151  ;;  %v104_v23 = vpop.permute.xlu0 %103 }
  0xc9   :  { %vm188_vm10 = vcmp.eq.s32.totalorder %v946_v58, %v152_v22  ;;  %vm172_vm11 = vcmp.eq.s32.totalorder %v946_v58, %v104_v23 }
  0xca   :  { %676 = vmatmul.mubr.msk.f32.gmra.mrb[12].mxu0 %vm172_vm11, %v813_v61  ;;  %700 = vmatmul.mubr.msk.f32.gmra.mrb[12].mxu1 %vm188_vm10, %v813_v61 }
  0xcc   :  { %v155_v24 = vpop.permute.xlu1 %154  ;;  %v107_v25 = vpop.permute.xlu0 %106 }
  0xcd   :  { %vm189_vm12 = vcmp.eq.s32.totalorder %v946_v58, %v155_v24  ;;  %vm173_vm13 = vcmp.eq.s32.totalorder %v946_v58, %v107_v25  ;;  %v250_v24 = vld [vmem:[%s1125_s2 + $0x58] sm:$0xff] }
  0xce   :  { %678 = vmatprep.mubr.msk.f32.mxu0 %vm173_vm13, %v813_v61  ;;  %702 = vmatprep.mubr.msk.f32.mxu1 %vm189_vm12, %v813_v61  ;;  %v266_v25 = vld [vmem:[%s1125_s2 + $0xd8] sm:$0xff] }
  0xd0   :  { %v158_v26 = vpop.permute.xlu1 %157  ;;  %v110_v27 = vpop.permute.xlu0 %109 }
  0xd1   :  { %vm190_vm14 = vcmp.eq.s32.totalorder %v946_v58, %v158_v26  ;;  %vm174_vm15 = vcmp.eq.s32.totalorder %v946_v58, %v110_v27  ;;  %v249_v26 = vld [vmem:[%s1125_s2 + $0x50] sm:$0xff] }
  0xd2   :  { %679 = vmatmul.mubr.msk.f32.gmra.mrb[14].mxu0 %vm174_vm15, %v813_v61  ;;  %703 = vmatmul.mubr.msk.f32.gmra.mrb[14].mxu1 %vm190_vm14, %v813_v61  ;;  %v265_v27 = vld [vmem:[%s1125_s2 + $0xd0] sm:$0xff] }
 0x16a   :  { %v659_v30 = vpop.f32.mrb[0].mxu0 }
 0x16b   :  { %v343_v31 = vadd.f32 %v659_v30, %v240_v28  ;;  %v337_v32 = vpop.f32.mrb[1].mxu0 }
 0x16c   :  { %v338_v33 = vadd.f32 %v337_v32, %v239_v29 }
 0x16d   :  { %497 = vst [vmem:[#allocation5 + $0x8] sm:$0xff] %v343_v31 }
 0x16e   :  { %496 = vst [vmem:[#allocation5] sm:$0xff] %v338_v33  ;;  %v683_v36 = vpop.f32.mrb[0].mxu1 }
 0x16f   :  { %v423_v37 = vadd.f32 %v683_v36, %v256_v34  ;;  %v417_v38 = vpop.f32.mrb[1].mxu1  ;;  %v252_v36 = vld [vmem:[%s1125_s2 + $0x68] sm:$0xff] }
 0x170   :  { %v418_v39 = vadd.f32 %v417_v38, %v255_v35  ;;  %v251_v38 = vld [vmem:[%s1125_s2 + $0x60] sm:$0xff] }
 0x171   :  { %513 = vst [vmem:[#allocation5 + $0x88] sm:$0xff] %v423_v37  ;;  %v268_v37 = vld [vmem:[%s1125_s2 + $0xe8] sm:$0xff] }
 0x172   :  { %512 = vst [vmem:[#allocation5 + $0x80] sm:$0xff] %v418_v39  ;;  %v267_v39 = vld [vmem:[%s1125_s2 + $0xe0] sm:$0xff] }
 0x175   :  { %v662_v44 = vpop.f32.mrb[2].mxu0  ;;  %v686_v45 = vpop.f32.mrb[2].mxu1 }
 0x176   :  { %v353_v46 = vadd.f32 %v662_v44, %v242_v40  ;;  %v433_v47 = vadd.f32 %v686_v45, %v258_v41  ;;  %v347_v48 = vpop.f32.mrb[3].mxu0  ;;  %v427_v49 = vpop.f32.mrb[3].mxu1 }
 0x177   :  { %v348_v50 = vadd.f32 %v347_v48, %v241_v42  ;;  %v428_v51 = vadd.f32 %v427_v49, %v257_v43  ;;  %v254_v48 = vld [vmem:[%s1125_s2 + $0x78] sm:$0xff] }
 0x178   :  { %499 = vst [vmem:[#allocation5 + $0x18] sm:$0xff] %v353_v46  ;;  %515 = vst [vmem:[#allocation5 + $0x98] sm:$0xff] %v433_v47  ;;  %v270_v49 = vld [vmem:[%s1125_s2 + $0xf8] sm:$0xff] }
 0x179   :  { %498 = vst [vmem:[#allocation5 + $0x10] sm:$0xff] %v348_v50  ;;  %514 = vst [vmem:[#allocation5 + $0x90] sm:$0xff] %v428_v51  ;;  %v253_v50 = vld [vmem:[%s1125_s2 + $0x70] sm:$0xff] }
 0x17a   :  { %v269_v51 = vld [vmem:[%s1125_s2 + $0xf0] sm:$0xff] }
 0x17d   :  { %v665_v56 = vpop.f32.mrb[4].mxu0  ;;  %v689_v57 = vpop.f32.mrb[4].mxu1 }
 0x17e   :  { %v363_v58 = vadd.f32 %v665_v56, %v244_v52  ;;  %v443_v59 = vadd.f32 %v689_v57, %v260_v53  ;;  %v357_v60 = vpop.f32.mrb[5].mxu0  ;;  %v437_v61 = vpop.f32.mrb[5].mxu1 }
 0x17f   :  { %v358_v62 = vadd.f32 %v357_v60, %v243_v54  ;;  %v438_v63 = vadd.f32 %v437_v61, %v259_v55 }
 0x180   :  { %501 = vst [vmem:[#allocation5 + $0x28] sm:$0xff] %v363_v58  ;;  %517 = vst [vmem:[#allocation5 + $0xa8] sm:$0xff] %v443_v59 }
 0x181   :  { %500 = vst [vmem:[#allocation5 + $0x20] sm:$0xff] %v358_v62  ;;  %516 = vst [vmem:[#allocation5 + $0xa0] sm:$0xff] %v438_v63 }
 0x185   :  { %v668_v4 = vpop.f32.mrb[6].mxu0  ;;  %v692_v5 = vpop.f32.mrb[6].mxu1 }
 0x186   :  { %v373_v6 = vadd.f32 %v668_v4, %v246_v0  ;;  %v453_v7 = vadd.f32 %v692_v5, %v262_v1  ;;  %v367_v8 = vpop.f32.mrb[7].mxu0  ;;  %v447_v9 = vpop.f32.mrb[7].mxu1 }
 0x187   :  { %v368_v10 = vadd.f32 %v367_v8, %v245_v2  ;;  %v448_v11 = vadd.f32 %v447_v9, %v261_v3 }
 0x188   :  { %503 = vst [vmem:[#allocation5 + $0x38] sm:$0xff] %v373_v6  ;;  %519 = vst [vmem:[#allocation5 + $0xb8] sm:$0xff] %v453_v7 }
 0x189   :  { %502 = vst [vmem:[#allocation5 + $0x30] sm:$0xff] %v368_v10  ;;  %518 = vst [vmem:[#allocation5 + $0xb0] sm:$0xff] %v448_v11 }
 0x18d   :  { %v671_v16 = vpop.f32.mrb[8].mxu0  ;;  %v695_v17 = vpop.f32.mrb[8].mxu1 }
 0x18e   :  { %v383_v18 = vadd.f32 %v671_v16, %v248_v12  ;;  %v463_v19 = vadd.f32 %v695_v17, %v264_v13  ;;  %v377_v20 = vpop.f32.mrb[9].mxu0  ;;  %v457_v21 = vpop.f32.mrb[9].mxu1 }
 0x18f   :  { %v378_v22 = vadd.f32 %v377_v20, %v247_v14  ;;  %v458_v23 = vadd.f32 %v457_v21, %v263_v15 }
 0x190   :  { %505 = vst [vmem:[#allocation5 + $0x48] sm:$0xff] %v383_v18  ;;  %521 = vst [vmem:[#allocation5 + $0xc8] sm:$0xff] %v463_v19 }
 0x191   :  { %504 = vst [vmem:[#allocation5 + $0x40] sm:$0xff] %v378_v22  ;;  %520 = vst [vmem:[#allocation5 + $0xc0] sm:$0xff] %v458_v23 }
 0x195   :  { %v674_v28 = vpop.f32.mrb[10].mxu0  ;;  %v698_v29 = vpop.f32.mrb[10].mxu1 }
 0x196   :  { %v393_v30 = vadd.f32 %v674_v28, %v250_v24  ;;  %v473_v31 = vadd.f32 %v698_v29, %v266_v25  ;;  %v387_v32 = vpop.f32.mrb[11].mxu0  ;;  %v467_v33 = vpop.f32.mrb[11].mxu1 }
 0x197   :  { %v388_v34 = vadd.f32 %v387_v32, %v249_v26  ;;  %v468_v35 = vadd.f32 %v467_v33, %v265_v27 }
 0x198   :  { %507 = vst [vmem:[#allocation5 + $0x58] sm:$0xff] %v393_v30  ;;  %523 = vst [vmem:[#allocation5 + $0xd8] sm:$0xff] %v473_v31 }
 0x199   :  { %506 = vst [vmem:[#allocation5 + $0x50] sm:$0xff] %v388_v34  ;;  %522 = vst [vmem:[#allocation5 + $0xd0] sm:$0xff] %v468_v35 }
 0x19d   :  { %v677_v40 = vpop.f32.mrb[12].mxu0  ;;  %v701_v41 = vpop.f32.mrb[12].mxu1 }
 0x19e   :  { %v403_v42 = vadd.f32 %v677_v40, %v252_v36  ;;  %v483_v43 = vadd.f32 %v701_v41, %v268_v37  ;;  %v397_v44 = vpop.f32.mrb[13].mxu0  ;;  %v477_v45 = vpop.f32.mrb[13].mxu1 }
 0x19f   :  { %v398_v46 = vadd.f32 %v397_v44, %v251_v38  ;;  %v478_v47 = vadd.f32 %v477_v45, %v267_v39 }
 0x1a0   :  { %509 = vst [vmem:[#allocation5 + $0x68] sm:$0xff] %v403_v42  ;;  %525 = vst [vmem:[#allocation5 + $0xe8] sm:$0xff] %v483_v43 }
 0x1a1   :  { %508 = vst [vmem:[#allocation5 + $0x60] sm:$0xff] %v398_v46  ;;  %524 = vst [vmem:[#allocation5 + $0xe0] sm:$0xff] %v478_v47 }
 0x1a5   :  { %v680_v52 = vpop.f32.mrb[14].mxu0  ;;  %v704_v53 = vpop.f32.mrb[14].mxu1 }
 0x1a6   :  { %v413_v54 = vadd.f32 %v680_v52, %v254_v48  ;;  %v493_v55 = vadd.f32 %v704_v53, %v270_v49  ;;  %v407_v56 = vpop.f32.mrb[15].mxu0  ;;  %v487_v57 = vpop.f32.mrb[15].mxu1 }
 0x1a7   :  { %v408_v58 = vadd.f32 %v407_v56, %v253_v50  ;;  %v488_v59 = vadd.f32 %v487_v57, %v269_v51 }
 0x1a8   :  { %511 = vst [vmem:[#allocation5 + $0x78] sm:$0xff] %v413_v54  ;;  %527 = vst [vmem:[#allocation5 + $0xf8] sm:$0xff] %v493_v55 }
 0x1a9   :  { %510 = vst [vmem:[#allocation5 + $0x70] sm:$0xff] %v408_v58  ;;  %526 = vst [vmem:[#allocation5 + $0xf0] sm:$0xff] %v488_v59 }
 0x1aa   :  { %794 = shalt.err (!%p791_p12)
}
 0x1ab   :  { %s795_s25 = scalar_lea.hbm %s1126_s3, 4096 }
 0x1ac   :  { %p796_p13 = scmp.ne.s32.totalorder %s1126_s3, %s795_s25  ;;  %p799_p0 = scmp.lt.u32.totalorder %s795_s25, %s1126_s3 }
 0x1ae   :  { %p801_p1 = pnand %p799_p0, %p796_p13 }
 0x1b0   :  { %804 = shalt.err (!%p801_p1)
}
 0x1b1   :  { %539 = dma.vmem_to_hbm [thread:$0]  %s534_s20, 4096, %s1126_s3, [#allocation4], %s810_s22, %s810_s22, %s811_s23  }
 0x1b2   :  { %807 = dma.done.wait [#allocation4], 4096  }
 0x1b3   :  { %808 = vsyncadd [#allocation4], 4294963200 }
 0x1b4   :  { %543 = vsyncpa [#allocation3], 1 }
 0x1b5   :  { %544 = vsyncpa [#allocation4], 1 }

</bundles_post_ra>
